<compile_context>
chip_gen: v7x
topology: tpu7x:2x2x1
jax: 0.10.0
libtpu: 0.0.40
codegen_flags: <defaults>
</compile_context>

<pallas_src>
import functools

import jax
import jax.numpy as jnp
import numpy as np
from jax import lax
from jax.experimental import pallas as pl
from jax.experimental.pallas import tpu as pltpu


def _round_up(x, m):
    return (x + m - 1) // m * m


def _cnn_kernel(x_ref, wf_ref, bf_ref, wl_ref, bl_ref, out_ref, *,
                lout, lout_pad, kmax, c, f_pad, out_size):
    # x_ref : (BN, L_TIME, C)   bf16  (time-major, channels in lanes)
    # wf_ref: (KMAX, C, F_PAD)  bf16  (all three conv banks fused, tap-major)
    # bf_ref: (1, F_PAD)        f32
    # wl_ref: (F_PAD, OUT_PAD)  bf16
    # bl_ref: (1, OUT_PAD)      f32
    # out_ref:(BN, OUT_PAD)     f32
    bn = x_ref.shape[0]
    m = bn * lout_pad

    # Per-tap conv accumulation: z[n, p, f] = sum_k x[n, p + k, :] @ W[k].
    # Each tap is a static-offset read of the VMEM block; no im2col slab is built.
    def tap(k):
        xk = x_ref[:, pl.ds(k, lout_pad), :]                 # (BN, LOUT_PAD, C) bf16
        return jnp.dot(xk.reshape(m, c), wf_ref[k],
                       preferred_element_type=jnp.float32)   # f32 accumulation

    z = tap(0)
    for k in range(1, kmax):
        z = z + tap(k)
    z = (z + bf_ref[...]).reshape(bn, lout_pad, f_pad)        # (BN, LOUT_PAD, F_PAD) f32

    # Mask invalid trailing time positions per conv bank, then max over time + ReLU.
    # conv_a (k=5): L-4 valid positions; conv_b (k=4): L-3; conv_c (k=3) & pad: L-2.
    pos = lax.broadcasted_iota(jnp.int32, z.shape, 1)
    lane = lax.broadcasted_iota(jnp.int32, z.shape, 2)
    thresh = jnp.where(lane < 20, lout - 2,
                       jnp.where(lane < 40, lout - 1, lout))
    z = jnp.where(pos < thresh, z, -jnp.inf)
    feat = jnp.maximum(jnp.max(z, axis=1), 0.0)               # (BN, F_PAD) f32

    # Linear head: bf16 operands, f32 accumulation, lane-dense 128-wide logits slab.
    logits = jnp.dot(feat.astype(jnp.bfloat16), wl_ref[...],
                     preferred_element_type=jnp.float32) + bl_ref[...]
    col = lax.broadcasted_iota(jnp.int32, logits.shape, 1)
    logits = jnp.where(col < out_size, logits, -jnp.inf)

    # log_softmax over the valid classes (padded lanes contribute exp(-inf) == 0).
    mx = jnp.max(logits, axis=1, keepdims=True)
    zc = logits - mx
    lse = jnp.log(jnp.sum(jnp.exp(zc), axis=1, keepdims=True))
    out_ref[...] = jnp.where(col < out_size, zc - lse, 0.0).astype(out_ref.dtype)


def cnn_classifier_forward(x_ncl, params, *, block_n=512):
    """x_ncl: (N, C, L) float32 (PyTorch Conv1d layout). Returns (N, output_size)."""
    N, C, L = x_ncl.shape
    assert L >= 5, "sequence must be at least the largest conv kernel (5)"
    out_size = params['lin_w'].shape[0]

    KMAX = 5
    LOUT = L - 2                           # widest conv output (kernel 3)
    LOUT_PAD = _round_up(LOUT, 16)         # bf16 packed-sublane friendly time tiling
    L_TIME = LOUT_PAD + KMAX - 1           # time extent touched by the 5 tap reads
    F_PAD = 64                             # 60 conv features padded
    OUT_PAD = _round_up(out_size, 128)     # lane-dense logits, sliced off after call

    # (N, C, L) -> (N, L_TIME, C), zero-padded time, streamed as bf16 (halves the DMA).
    x_nlc = jnp.transpose(x_ncl, (0, 2, 1))
    x_pad = jnp.pad(x_nlc, ((0, 0), (0, L_TIME - L), (0, 0))).astype(jnp.bfloat16)

    # Fuse the three conv banks into one tap-major (KMAX, C, F_PAD) bf16 slab.
    def tap_slab(w):                       # torch layout (20, C, k)
        k = w.shape[2]
        ws = jnp.transpose(w, (2, 1, 0))   # (k, C, 20): [tap, in_channel, out_channel]
        return jnp.pad(ws, ((0, KMAX - k), (0, 0), (0, 0)))   # zero rows for unused taps

    w_fused = jnp.concatenate(
        [tap_slab(params['conv_a_w']), tap_slab(params['conv_b_w']),
         tap_slab(params['conv_c_w'])], axis=2)                # (KMAX, C, 60)
    w_fused = jnp.pad(w_fused, ((0, 0), (0, 0), (0, F_PAD - 60))).astype(jnp.bfloat16)

    b_fused = jnp.concatenate(
        [params['conv_a_b'], params['conv_b_b'], params['conv_c_b']])
    b_fused = jnp.pad(b_fused, (0, F_PAD - 60)).reshape(1, F_PAD).astype(jnp.float32)

    wl = jnp.pad(params['lin_w'].T,
                 ((0, F_PAD - 60), (0, OUT_PAD - out_size))).astype(jnp.bfloat16)
    bl = jnp.pad(params['lin_b'],
                 (0, OUT_PAD - out_size)).reshape(1, OUT_PAD).astype(jnp.float32)

    # --- Batch block size: working-set bounded, and split >= 2 ways for v7x's 2 TCs. ---
    def block_vmem_bytes(bn):
        x_buf = 2 * bn * L_TIME * C * 2        # bf16 input, double-buffered
        acc = bn * LOUT_PAD * F_PAD * 4        # f32 conv accumulator
        tapb = bn * LOUT_PAD * C * 2           # one live tap slab (bf16)
        outb = 2 * bn * OUT_PAD * 4            # f32 logits, double-buffered
        return x_buf + acc + tapb + outb

    VMEM_BUDGET = 24 * 1024 * 1024             # headroom under the 32 MiB scoped limit
    BN = min(block_n, N)
    if N > 1:                                  # guarantee >= 2 grid steps when possible
        BN = min(BN, _round_up(pl.cdiv(N, 2), 8))
    while BN > 8 and block_vmem_bytes(BN) > VMEM_BUDGET:
        BN = _round_up(BN // 2, 8)
    BN = max(1, min(BN, N))
    grid = (pl.cdiv(N, BN),)

    kernel = functools.partial(
        _cnn_kernel, lout=LOUT, lout_pad=LOUT_PAD, kmax=KMAX, c=C,
        f_pad=F_PAD, out_size=out_size)

    out_padded = pl.pallas_call(
        kernel,
        out_shape=jax.ShapeDtypeStruct((N, OUT_PAD), jnp.float32),
        grid_spec=pltpu.PrefetchScalarGridSpec(
            num_scalar_prefetch=0,
            grid=grid,
            in_specs=[
                pl.BlockSpec((BN, L_TIME, C), lambda i: (i, 0, 0)),
                pl.BlockSpec((KMAX, C, F_PAD), lambda i: (0, 0, 0)),
                pl.BlockSpec((1, F_PAD), lambda i: (0, 0)),
                pl.BlockSpec((F_PAD, OUT_PAD), lambda i: (0, 0)),
                pl.BlockSpec((1, OUT_PAD), lambda i: (0, 0)),
            ],
            out_specs=pl.BlockSpec((BN, OUT_PAD), lambda i: (i, 0)),
        ),
        compiler_params=pltpu.CompilerParams(
            dimension_semantics=("parallel",),
            vmem_limit_bytes=32 * 1024 * 1024),
    )(x_pad, w_fused, b_fused, wl, bl)

    return out_padded[:, :out_size]


def init_params(key, input_size, output_size):
    """Deterministic init matching PyTorch parameter shapes (values synthetic)."""
    ks = jax.random.split(key, 8)

    def unif(k, shape, fan_in):
        bound = 1.0 / np.sqrt(fan_in)
        return jax.random.uniform(k, shape, jnp.float32, -bound, bound)

    return {
        'conv_a_w': unif(ks[0], (20, input_size, 5), input_size * 5),
        'conv_a_b': unif(ks[1], (20,), input_size * 5),
        'conv_b_w': unif(ks[2], (20, input_size, 4), input_size * 4),
        'conv_b_b': unif(ks[3], (20,), input_size * 4),
        'conv_c_w': unif(ks[4], (20, input_size, 3), input_size * 3),
        'conv_c_b': unif(ks[5], (20,), input_size * 3),
        'lin_w': unif(ks[6], (output_size, 60), 60),
        'lin_b': unif(ks[7], (output_size,), 60),
    }


def reference_forward(x_ncl, params):
    """Pure-JAX reference reproducing the PyTorch forward semantics (f32)."""
    def conv1d(x, w, b):
        y = lax.conv_general_dilated(
            x, w, window_strides=(1,), padding='VALID',
            dimension_numbers=('NCH', 'OIH', 'NCH'))
        return y + b[None, :, None]

    fa = jnp.max(conv1d(x_ncl, params['conv_a_w'], params['conv_a_b']), axis=2)
    fb = jnp.max(conv1d(x_ncl, params['conv_b_w'], params['conv_b_b']), axis=2)
    fc = jnp.max(conv1d(x_ncl, params['conv_c_w'], params['conv_c_b']), axis=2)
    feat = jnp.concatenate([fa, fb, fc], axis=1)
    logits = jnp.maximum(feat, 0.0) @ params['lin_w'].T + params['lin_b']
    return jax.nn.log_softmax(logits, axis=1)


if __name__ == "__main__":
    N, input_size, seq_len, output_size = 2, 32, 16, 8

    key = jax.random.PRNGKey(0)
    k_x, k_p = jax.random.split(key)

    def q(a):  # keep values exactly bf16-representable so the bf16 MXU path is lossless
        return a.astype(jnp.bfloat16).astype(jnp.float32)

    x = q(jax.random.normal(k_x, (N, input_size, seq_len), dtype=jnp.float32))
    params = {k: q(v) for k, v in init_params(k_p, input_size, output_size).items()}

    out = jax.block_until_ready(cnn_classifier_forward(x, params))
    ref = jax.block_until_ready(reference_forward(x, params))

    assert out.shape == (N, output_size)
    # Tolerance 2e-3: pooled features are rounded to bf16 before the linear head
    # (bf16 MXU operands everywhere, f32 accumulation) per the performance review.
    assert np.allclose(np.asarray(out), np.asarray(ref), atol=2e-3, rtol=2e-3), (
        float(np.max(np.abs(np.asarray(out) - np.asarray(ref)))))
    print("KERNEL_OK")
</pallas_src>

<mosaic_0001>
module attributes {stable_mosaic.version = 11 : i64} {
  func.func @_cnn_kernel(%arg0: i32, %arg1: memref<2x20x32xbf16, #tpu.memory_space<vmem>>, %arg2: memref<5x32x64xbf16, #tpu.memory_space<vmem>>, %arg3: memref<1x64xf32, #tpu.memory_space<vmem>>, %arg4: memref<64x128xbf16, #tpu.memory_space<vmem>>, %arg5: memref<1x128xf32, #tpu.memory_space<vmem>>, %arg6: memref<2x128xf32, #tpu.memory_space<vmem>>) attributes {dimension_semantics = [#tpu.dimension_semantics<parallel>], iteration_bounds = array<i64: 1>, scalar_prefetch = 0 : i64, scratch_operands = 0 : i64, tpu.core_type = #tpu.core_type<tc>, window_params = [{transform_indices = @transform_0, window_bounds = array<i64: 2, 20, 32>}, {pipeline_mode = #tpu.pipeline_mode<synchronous>, transform_indices = @transform_1, window_bounds = array<i64: 5, 32, 64>}, {pipeline_mode = #tpu.pipeline_mode<synchronous>, transform_indices = @transform_2, window_bounds = array<i64: 1, 64>}, {pipeline_mode = #tpu.pipeline_mode<synchronous>, transform_indices = @transform_3, window_bounds = array<i64: 64, 128>}, {pipeline_mode = #tpu.pipeline_mode<synchronous>, transform_indices = @transform_4, window_bounds = array<i64: 1, 128>}, {transform_indices = @transform_5, window_bounds = array<i64: 2, 128>}]} {
    %c0 = arith.constant 0 : index
    %c0_0 = arith.constant 0 : index
    %c0_1 = arith.constant 0 : index
    %0 = vector.load %arg1[%c0, %c0_0, %c0_1] : memref<2x20x32xbf16, #tpu.memory_space<vmem>>, vector<2x16x32xbf16>
    %1 = vector.shape_cast %0 : vector<2x16x32xbf16> to vector<32x32xbf16>
    %c0_2 = arith.constant 0 : index
    %c0_3 = arith.constant 0 : index
    %c0_4 = arith.constant 0 : index
    %2 = vector.load %arg2[%c0_2, %c0_3, %c0_4] : memref<5x32x64xbf16, #tpu.memory_space<vmem>>, vector<1x32x64xbf16>
    %3 = vector.shape_cast %2 : vector<1x32x64xbf16> to vector<32x64xbf16>
    %cst = arith.constant dense<0.000000e+00> : vector<32x64xf32>
    %4 = tpu.matmul %1, %3, %cst {dimension_numbers = #tpu.dot_dimension_numbers<[1], [0], [0], [1], [0, 0, 1, 1], [], []>} : vector<32x32xbf16>, vector<32x64xbf16>, vector<32x64xf32> -> vector<32x64xf32>
    %c0_5 = arith.constant 0 : index
    %c1 = arith.constant 1 : index
    %c0_6 = arith.constant 0 : index
    %5 = vector.load %arg1[%c0_5, %c1, %c0_6] : memref<2x20x32xbf16, #tpu.memory_space<vmem>>, vector<2x16x32xbf16>
    %6 = vector.shape_cast %5 : vector<2x16x32xbf16> to vector<32x32xbf16>
    %c1_7 = arith.constant 1 : index
    %c0_8 = arith.constant 0 : index
    %c0_9 = arith.constant 0 : index
    %7 = vector.load %arg2[%c1_7, %c0_8, %c0_9] : memref<5x32x64xbf16, #tpu.memory_space<vmem>>, vector<1x32x64xbf16>
    %8 = vector.shape_cast %7 : vector<1x32x64xbf16> to vector<32x64xbf16>
    %cst_10 = arith.constant dense<0.000000e+00> : vector<32x64xf32>
    %9 = tpu.matmul %6, %8, %cst_10 {dimension_numbers = #tpu.dot_dimension_numbers<[1], [0], [0], [1], [0, 0, 1, 1], [], []>} : vector<32x32xbf16>, vector<32x64xbf16>, vector<32x64xf32> -> vector<32x64xf32>
    %10 = arith.addf %4, %9 : vector<32x64xf32>
    %c0_11 = arith.constant 0 : index
    %c2 = arith.constant 2 : index
    %c0_12 = arith.constant 0 : index
    %11 = vector.load %arg1[%c0_11, %c2, %c0_12] : memref<2x20x32xbf16, #tpu.memory_space<vmem>>, vector<2x16x32xbf16>
    %12 = vector.shape_cast %11 : vector<2x16x32xbf16> to vector<32x32xbf16>
    %c2_13 = arith.constant 2 : index
    %c0_14 = arith.constant 0 : index
    %c0_15 = arith.constant 0 : index
    %13 = vector.load %arg2[%c2_13, %c0_14, %c0_15] : memref<5x32x64xbf16, #tpu.memory_space<vmem>>, vector<1x32x64xbf16>
    %14 = vector.shape_cast %13 : vector<1x32x64xbf16> to vector<32x64xbf16>
    %cst_16 = arith.constant dense<0.000000e+00> : vector<32x64xf32>
    %15 = tpu.matmul %12, %14, %cst_16 {dimension_numbers = #tpu.dot_dimension_numbers<[1], [0], [0], [1], [0, 0, 1, 1], [], []>} : vector<32x32xbf16>, vector<32x64xbf16>, vector<32x64xf32> -> vector<32x64xf32>
    %16 = arith.addf %10, %15 : vector<32x64xf32>
    %c0_17 = arith.constant 0 : index
    %c3 = arith.constant 3 : index
    %c0_18 = arith.constant 0 : index
    %17 = vector.load %arg1[%c0_17, %c3, %c0_18] : memref<2x20x32xbf16, #tpu.memory_space<vmem>>, vector<2x16x32xbf16>
    %18 = vector.shape_cast %17 : vector<2x16x32xbf16> to vector<32x32xbf16>
    %c3_19 = arith.constant 3 : index
    %c0_20 = arith.constant 0 : index
    %c0_21 = arith.constant 0 : index
    %19 = vector.load %arg2[%c3_19, %c0_20, %c0_21] : memref<5x32x64xbf16, #tpu.memory_space<vmem>>, vector<1x32x64xbf16>
    %20 = vector.shape_cast %19 : vector<1x32x64xbf16> to vector<32x64xbf16>
    %cst_22 = arith.constant dense<0.000000e+00> : vector<32x64xf32>
    %21 = tpu.matmul %18, %20, %cst_22 {dimension_numbers = #tpu.dot_dimension_numbers<[1], [0], [0], [1], [0, 0, 1, 1], [], []>} : vector<32x32xbf16>, vector<32x64xbf16>, vector<32x64xf32> -> vector<32x64xf32>
    %22 = arith.addf %16, %21 : vector<32x64xf32>
    %c0_23 = arith.constant 0 : index
    %c4 = arith.constant 4 : index
    %c0_24 = arith.constant 0 : index
    %23 = vector.load %arg1[%c0_23, %c4, %c0_24] : memref<2x20x32xbf16, #tpu.memory_space<vmem>>, vector<2x16x32xbf16>
    %24 = vector.shape_cast %23 : vector<2x16x32xbf16> to vector<32x32xbf16>
    %c4_25 = arith.constant 4 : index
    %c0_26 = arith.constant 0 : index
    %c0_27 = arith.constant 0 : index
    %25 = vector.load %arg2[%c4_25, %c0_26, %c0_27] : memref<5x32x64xbf16, #tpu.memory_space<vmem>>, vector<1x32x64xbf16>
    %26 = vector.shape_cast %25 : vector<1x32x64xbf16> to vector<32x64xbf16>
    %cst_28 = arith.constant dense<0.000000e+00> : vector<32x64xf32>
    %27 = tpu.matmul %24, %26, %cst_28 {dimension_numbers = #tpu.dot_dimension_numbers<[1], [0], [0], [1], [0, 0, 1, 1], [], []>} : vector<32x32xbf16>, vector<32x64xbf16>, vector<32x64xf32> -> vector<32x64xf32>
    %28 = arith.addf %22, %27 : vector<32x64xf32>
    %c0_29 = arith.constant 0 : index
    %c0_30 = arith.constant 0 : index
    %29 = vector.load %arg3[%c0_29, %c0_30] : memref<1x64xf32, #tpu.memory_space<vmem>>, vector<1x64xf32>
    %30 = vector.broadcast %29 : vector<1x64xf32> to vector<32x64xf32>
    %31 = arith.addf %28, %30 : vector<32x64xf32>
    %32 = vector.shape_cast %31 : vector<32x64xf32> to vector<2x16x64xf32>
    %33 = tpu.iota {dimensions = array<i32: 1>} : vector<2x16x64xi32>
    %34 = tpu.iota {dimensions = array<i32: 2>} : vector<2x16x64xi32>
    %c20_i32 = arith.constant 20 : i32
    %35 = vector.broadcast %c20_i32 : i32 to vector<2x16x64xi32>
    %36 = arith.cmpi slt, %34, %35 : vector<2x16x64xi32>
    %c40_i32 = arith.constant 40 : i32
    %37 = vector.broadcast %c40_i32 : i32 to vector<2x16x64xi32>
    %38 = arith.cmpi slt, %34, %37 : vector<2x16x64xi32>
    %c13_i32 = arith.constant 13 : i32
    %c14_i32 = arith.constant 14 : i32
    %39 = vector.broadcast %c13_i32 : i32 to vector<2x16x64xi32>
    %40 = vector.broadcast %c14_i32 : i32 to vector<2x16x64xi32>
    %41 = arith.select %38, %39, %40 : vector<2x16x64xi1>, vector<2x16x64xi32>
    %c12_i32 = arith.constant 12 : i32
    %42 = vector.broadcast %c12_i32 : i32 to vector<2x16x64xi32>
    %43 = arith.select %36, %42, %41 : vector<2x16x64xi1>, vector<2x16x64xi32>
    %44 = arith.cmpi slt, %33, %43 : vector<2x16x64xi32>
    %cst_31 = arith.constant 0xFF800000 : f32
    %45 = vector.broadcast %cst_31 : f32 to vector<2x16x64xf32>
    %46 = arith.select %44, %32, %45 : vector<2x16x64xi1>, vector<2x16x64xf32>
    %cst_32 = arith.constant dense<0xFF800000> : vector<2x64xf32>
    %47 = vector.multi_reduction <maximumf>, %46, %cst_32 [1] : vector<2x16x64xf32> to vector<2x64xf32>
    %cst_33 = arith.constant 0.000000e+00 : f32
    %48 = vector.broadcast %cst_33 : f32 to vector<2x64xf32>
    %49 = arith.maximumf %47, %48 : vector<2x64xf32>
    %50 = arith.truncf %49 : vector<2x64xf32> to vector<2x64xbf16>
    %c0_34 = arith.constant 0 : index
    %c0_35 = arith.constant 0 : index
    %51 = vector.load %arg4[%c0_34, %c0_35] : memref<64x128xbf16, #tpu.memory_space<vmem>>, vector<64x128xbf16>
    %cst_36 = arith.constant dense<0.000000e+00> : vector<2x128xf32>
    %52 = tpu.matmul %50, %51, %cst_36 {dimension_numbers = #tpu.dot_dimension_numbers<[1], [0], [0], [1], [0, 0, 1, 1], [], []>} : vector<2x64xbf16>, vector<64x128xbf16>, vector<2x128xf32> -> vector<2x128xf32>
    %c0_37 = arith.constant 0 : index
    %c0_38 = arith.constant 0 : index
    %53 = vector.load %arg5[%c0_37, %c0_38] : memref<1x128xf32, #tpu.memory_space<vmem>>, vector<1x128xf32>
    %54 = vector.broadcast %53 : vector<1x128xf32> to vector<2x128xf32>
    %55 = arith.addf %52, %54 : vector<2x128xf32>
    %56 = tpu.iota {dimensions = array<i32: 1>} : vector<2x128xi32>
    %c8_i32 = arith.constant 8 : i32
    %57 = vector.broadcast %c8_i32 : i32 to vector<2x128xi32>
    %58 = arith.cmpi slt, %56, %57 : vector<2x128xi32>
    %cst_39 = arith.constant 0xFF800000 : f32
    %59 = vector.broadcast %cst_39 : f32 to vector<2x128xf32>
    %60 = arith.select %58, %55, %59 : vector<2x128xi1>, vector<2x128xf32>
    %cst_40 = arith.constant dense<0xFF800000> : vector<2xf32>
    %61 = vector.multi_reduction <maximumf>, %60, %cst_40 [1] : vector<2x128xf32> to vector<2xf32>
    %62 = vector.shape_cast %61 : vector<2xf32> to vector<2x1xf32>
    %63 = vector.broadcast %62 : vector<2x1xf32> to vector<2x128xf32>
    %64 = arith.subf %60, %63 : vector<2x128xf32>
    %65 = math.exp %64 : vector<2x128xf32>
    %cst_41 = arith.constant dense<0.000000e+00> : vector<2xf32>
    %66 = vector.multi_reduction <add>, %65, %cst_41 [1] : vector<2x128xf32> to vector<2xf32>
    %67 = vector.shape_cast %66 : vector<2xf32> to vector<2x1xf32>
    %68 = math.log %67 : vector<2x1xf32>
    %c8_i32_42 = arith.constant 8 : i32
    %69 = vector.broadcast %c8_i32_42 : i32 to vector<2x128xi32>
    %70 = arith.cmpi slt, %56, %69 : vector<2x128xi32>
    %71 = vector.broadcast %68 : vector<2x1xf32> to vector<2x128xf32>
    %72 = arith.subf %64, %71 : vector<2x128xf32>
    %cst_43 = arith.constant 0.000000e+00 : f32
    %73 = vector.broadcast %cst_43 : f32 to vector<2x128xf32>
    %74 = arith.select %70, %72, %73 : vector<2x128xi1>, vector<2x128xf32>
    %c0_44 = arith.constant 0 : index
    %c0_45 = arith.constant 0 : index
    %75 = vector.load %arg6[%c0_44, %c0_45] : memref<2x128xf32, #tpu.memory_space<vmem>>, vector<2x128xf32>
    tpu.vector_store %arg6[%c0_44, %c0_45], %74 {strides = array<i32>} : memref<2x128xf32, #tpu.memory_space<vmem>>, vector<2x128xf32>,
    return
  }
  func.func @transform_0(%arg0: i32) -> (i32, i32, i32) {
    %c0_i32 = arith.constant 0 : i32
    %c0_i32_0 = arith.constant 0 : i32
    %c0_i32_1 = arith.constant 0 : i32
    return %arg0, %c0_i32, %c0_i32_0 : i32, i32, i32
  }
  func.func @transform_1(%arg0: i32) -> (i32, i32, i32) {
    %c0_i32 = arith.constant 0 : i32
    %c0_i32_0 = arith.constant 0 : i32
    %c0_i32_1 = arith.constant 0 : i32
    %c0_i32_2 = arith.constant 0 : i32
    return %c0_i32, %c0_i32_0, %c0_i32_1 : i32, i32, i32
  }
  func.func @transform_2(%arg0: i32) -> (i32, i32) {
    %c0_i32 = arith.constant 0 : i32
    %c0_i32_0 = arith.constant 0 : i32
    %c0_i32_1 = arith.constant 0 : i32
    return %c0_i32, %c0_i32_0 : i32, i32
  }
  func.func @transform_3(%arg0: i32) -> (i32, i32) {
    %c0_i32 = arith.constant 0 : i32
    %c0_i32_0 = arith.constant 0 : i32
    %c0_i32_1 = arith.constant 0 : i32
    return %c0_i32, %c0_i32_0 : i32, i32
  }
  func.func @transform_4(%arg0: i32) -> (i32, i32) {
    %c0_i32 = arith.constant 0 : i32
    %c0_i32_0 = arith.constant 0 : i32
    %c0_i32_1 = arith.constant 0 : i32
    return %c0_i32, %c0_i32_0 : i32, i32
  }
  func.func @transform_5(%arg0: i32) -> (i32, i32) {
    %c0_i32 = arith.constant 0 : i32
    %c0_i32_0 = arith.constant 0 : i32
    return %arg0, %c0_i32 : i32, i32
  }
}

</mosaic_0001>

<bundles_post_ra>
// kernel: tpu_custom_call.1
= control target key start
LH: loop header
LB: loop body
LE: loop exit
PB: predicated region body
PF: predicated region fallthrough
CT: control target
= control target key end

     0   :  { %10 = vsyncpa [#allocation3], 0  ;;  %s1240_s0 = inlined_call_operand.vmem [shape: bf16[2,20,32], index: 0, kind: input, shape index: {}]   ;;  %s1241_s1 = inlined_call_operand.hbm [shape: bf16[5,32,64], index: 1, kind: input, shape index: {}]   ;;  %s1242_s2 = inlined_call_operand.vmem [shape: f32[1,64], index: 2, kind: input, shape index: {}]   ;;  %s1243_s3 = inlined_call_operand.vmem [shape: bf16[64,128], index: 3, kind: input, shape index: {}]   ;;  %s1244_s4 = inlined_call_operand.vmem [shape: f32[1,128], index: 4, kind: input, shape index: {}]   ;;  %s1245_s5 = inlined_call_operand.hbm [shape: f32[2,128], index: 5, kind: output, shape index: {}]  }
   0x1   :  { %11 = vsyncpa [#allocation4], 0  ;;  %s975_s18 = smov [#allocation2]   ;;  %s927_s22 = scalar_lea.hbm %s1241_s1, 1280 }
   0x2   :  { %s19_s19 = sshll.u32 %s975_s18, 4  ;;  %p928_p0 = scmp.ne.s32.totalorder %s1241_s1, %s927_s22  ;;  %s20_s19 = int_to_ptr.vmem [resolvable:$true] %s19_s19 }
   0x3   :  { %p931_p1 = scmp.lt.u32.totalorder %s927_s22, %s1241_s1 }
   0x5   :  { %p933_p2 = pnand %p931_p1, %p928_p0 }
   0x7   :  { %936 = shalt.err (!%p933_p2)
}
   0x8   :  { %s937_s27 = scalar_lea.vmem %s20_s19, 1280  ;;  %p942_p4 = scmp.lt.s32.totalorder %s20_s19, %s20_s19 }
   0x9   :  { %p938_p3 = scmp.ne.s32.totalorder %s20_s19, %s937_s27  ;;  %p943_p5 = scmp.lt.s32.totalorder %s937_s27, %s937_s27 }
   0xb   :  { %p944_p6 = por %p943_p5, %p942_p4 }
   0xd   :  { %p945_p7 = pnand %p944_p6, %p938_p3 }
   0xf   :  { %948 = shalt.err (!%p945_p7)
}
  0x10   :  { %s976_s28 = smov 64   ;;  %s977_s29 = smov 4  }
  0x11   :  { %25 = dma.hbm_to_vmem [thread:$0]  %s1241_s1, 1280, %s20_s19, [#allocation3], %s976_s28, %s976_s28, %s977_s29  }
  0x12   :  { %971 = dma.done.wait [#allocation3], 1280  }
  0x13   :  { %972 = vsyncadd [#allocation3], 4294966016  ;;  %v907_v0 = vld [vmem:[#allocation2] sm:$0xff]   ;;  %vm120_vm0 = vcmask 261120   ;;  %v908_v1 = vld [vmem:[#allocation2 + $0x8] sm:$0xff]   ;;  %vm259_vm1 = vcmask 1042432  }
  0x14   :  { %840 = vmatprep.subr.bf16.mxu0 %v907_v0  ;;  %v36_v2 = vld [vmem:[%s1240_s0] sm:$0xf]  ;;  %v1030_v3 = vld [vmem:[%s1240_s0 + $0x4] sm:$0xf]  ;;  %v38_v4 = vld [vmem:[%s1240_s0 + $0xc] sm:$0xf] }
  0x15   :  { %841 = vmatpush3.bf16.msra.mxu0 %v907_v0  ;;  %v50_v5 = vshrl.u32 %v36_v2, 16  ;;  %v53_v6 = vshll.u32 %v36_v2, 16  ;;  %v59_v7 = vshll.u32 %v1030_v3, 16  ;;  %v1039_v8 = vld [vmem:[%s1240_s0 + $0x10] sm:$0xf]  ;;  %vm260_vm2 = vcmask 1046532  }
  0x16   :  { %842 = vmatprep.subr.bf16.mxu0 %v908_v1  ;;  %v63_v9 = vshrl.u32 %v1030_v3, 16  ;;  %v772_v10 = vcombine.low %v36_v2, %v1030_v3  ;;  %v74_v11 = vshrl.u32 %v38_v4, 16  ;;  %v77_v12 = vshll.u32 %v38_v4, 16  ;;  %v911_v13 = vld [vmem:[#allocation2 + $0x20] sm:$0xff]   ;;  %v912_v20 = vld [vmem:[#allocation2 + $0x28] sm:$0xff]   ;;  %vm1063_vm5 = vmor %vm259_vm1, %vm260_vm2 }
  0x17   :  { %v1043_v14 = vrot.slane %v50_v5, 4  ;;  %v1045_v15 = vrot.slane %v53_v6, 5  ;;  %v83_v16 = vshll.u32 %v1039_v8, 16  ;;  %v87_v17 = vshrl.u32 %v1039_v8, 16  ;;  %v1056_v21 = vld [vmem:[%s1240_s0 + $0x8] sm:$0x1] }
  0x18   :  { %vm360_vm3 = vsmask.f32 2304  ;;  %vm361_vm4 = vsmask.f32 6416  ;;  %844 = vmatprep.mubr.msk.bf16.mxu0 %vm120_vm0, %v772_v10  ;;  %v1050_v18 = vrot.slane %v74_v11, 4  ;;  %v773_v19 = vcombine.low %v38_v4, %v1039_v8  ;;  %v1088_v39 = vld [vmem:[#allocation2 + $0x30] sm:$0xff]  }
  0x19   :  { %843 = vmatpush3.bf16.msra.mxu0 %v908_v1  ;;  %v253_v22 = vld [vmem:[%s1240_s0] sm:$0xe]  ;;  %v264_v24 = vrot.slane %v1030_v3, 5  ;;  %v271_v25 = vrot.slane %v1039_v8, 5  ;;  %v267_v27 = vrot.slane %v1056_v21, 5  ;;  %v1079_v34 = vrot.slane %v77_v12, 5  ;;  %vm1118_vm10 = vmor %vm360_vm3, %vm361_vm4 }
  0x1a   :  { %848 = vmatprep.subr.bf16.mxu0 %v911_v13  ;;  %v778_v26 = vrot.slane %v253_v22, 9  ;;  %v1073_v28 = vld [vmem:[%s1240_s0 + $0x14] sm:$0x1]  ;;  %v254_v29 = vld [vmem:[%s1240_s0 + $0xc] sm:$0xe]  ;;  %v364_v36 = vshrl.u32 %v253_v22, 16  ;;  %v56_v42 = vor.u32 %v1045_v15, %v1043_v14 }
  0x1b   :  { %v266_v30 = vrot.slane %v264_v24, 4  ;;  %v779_v31 = vrot.slane %v254_v29, 9  ;;  %v273_v32 = vrot.slane %v271_v25, 4  ;;  %v274_v33 = vrot.slane %v1073_v28, 5  ;;  %v1093_v40 = vld [vmem:[%s1240_s0 + $0x8] sm:$0x3] }
  0x1c   :  { %845 = vmatmul.mubr.msk.bf16.vlgmr.msra.gmra.mrb[0].mxu0 %vm120_vm0, %v773_v19  ;;  %v265_v35 = vsel %vm1063_vm5, %v778_v26, %v264_v24  ;;  %vm46_vm6 = vsmask.f32 3328  ;;  %vm47_vm7 = vsmask.f32 7440  ;;  %v367_v41 = vshll.u32 %v253_v22, 16  ;;  %v916_v56 = vld [vmem:[#allocation2 + $0x10] sm:$0xff]  }
  0x1d   :  { %849 = vmatpush3.bf16.msra.mxu0 %v911_v13  ;;  %v268_v37 = vsel %vm1063_vm5, %v266_v30, %v267_v27  ;;  %v272_v38 = vsel %vm1063_vm5, %v779_v31, %v271_v25  ;;  %v275_v44 = vsel %vm1063_vm5, %v273_v32, %v274_v33  ;;  %v366_v45 = vrot.slane %v364_v36, 5  ;;  %v1104_v47 = vld [vmem:[%s1240_s0 + $0x14] sm:$0x3]  ;;  %832 = vmatprep.subr.bf16.mxu1 %v916_v56  ;;  %v917_v2 = vld [vmem:[#allocation2 + $0x18] sm:$0xff]   ;;  %vm1142_vm11 = vmor %vm46_vm6, %vm47_vm7 }
  0x1e   :  { %850 = vmatprep.subr.bf16.mxu0 %v912_v20  ;;  %v780_v43 = vcombine.low %v265_v35, %v268_v37  ;;  %v372_v46 = vrot.slane %v63_v9, 5  ;;  %v369_v48 = vrot.slane %v367_v41, 6  ;;  %v373_v49 = vrot.slane %v59_v7, 6  ;;  %833 = vmatpush3.bf16.msra.mxu1 %v916_v56  ;;  %v914_v15 = vld [vmem:[#allocation2 + $0x38] sm:$0xff]   ;;  %v918_v56 = vld [vmem:[#allocation2 + $0x48] sm:$0xff]  }
  0x1f   :  { %v378_v50 = vshrl.u32 %v1093_v40, 16  ;;  %v381_v51 = vshll.u32 %v1093_v40, 16  ;;  %v387_v52 = vshrl.u32 %v254_v29, 16  ;;  %v390_v53 = vshll.u32 %v254_v29, 16  ;;  %834 = vmatprep.subr.bf16.mxu1 %v917_v2 }
  0x20   :  { %852 = vmatprep.mubr.msk.bf16.mxu0 %vm120_vm0, %v780_v43  ;;  %v395_v54 = vrot.slane %v87_v17, 5  ;;  %v396_v55 = vrot.slane %v83_v16, 6  ;;  %vm497_vm8 = vcmask 1041408   ;;  %vm498_vm9 = vcmask 1045508  }
  0x21   :  { %851 = vmatpush3.bf16.msra.mxu0 %v912_v20  ;;  %v370_v57 = vor.u32 %v369_v48, %v366_v45  ;;  %v374_v58 = vor.u32 %v373_v49, %v372_v46  ;;  %v380_v59 = vrot.slane %v378_v50, 5  ;;  %v383_v60 = vrot.slane %v381_v51, 6  ;;  %vm1159_vm12 = vmor %vm497_vm8, %vm498_vm9 }
  0x22   :  { %856 = vmatprep.subr.bf16.mxu0 %v1088_v39  ;;  %v389_v62 = vrot.slane %v387_v52, 5  ;;  %v392_v63 = vrot.slane %v390_v53, 6  ;;  %v1122_v0 = vor.u32 %v396_v55, %v395_v54  ;;  %v401_v1 = vshrl.u32 %v1104_v47, 16  ;;  %835 = vmatpush3.bf16.msra.mxu1 %v917_v2  ;;  %v922_v2 = vld [vmem:[%s1243_s3 + $0x18] sm:$0xff]  }
  0x23   :  { %v371_v4 = vrot.slane %v370_v57, 4  ;;  %v376_v5 = vrot.slane %v374_v58, 4  ;;  %v384_v6 = vor.u32 %v383_v60, %v380_v59  ;;  %v404_v10 = vshll.u32 %v1104_v47, 16  ;;  %v492_v57 = vld [vmem:[%s1240_s0 + $0xc] sm:$0xc] }
  0x24   :  { %v781_v11 = vcombine.low %v272_v38, %v275_v44  ;;  %v393_v12 = vor.u32 %v392_v63, %v389_v62  ;;  %v403_v13 = vrot.slane %v401_v1, 5  ;;  %v80_v14 = vor.u32 %v1079_v34, %v1050_v18  ;;  %v491_v18 = vld [vmem:[%s1240_s0] sm:$0xc]  ;;  %v921_v1 = vld [vmem:[%s1243_s3 + $0x10] sm:$0xff]  }
  0x25   :  { %v375_v19 = vsel %vm1118_vm10, %v371_v4, %v374_v58  ;;  %v385_v20 = vsel %vm1118_vm10, %v376_v5, %v384_v6  ;;  %v406_v22 = vrot.slane %v404_v10, 6  ;;  %v57_v23 = vrot.slane %v56_v42, 4  ;;  %v919_v63 = vld [vmem:[%s1243_s3] sm:$0xff]  }
  0x26   :  { %v786_v24 = vcombine.low %v375_v19, %v385_v20  ;;  %v61_v25 = vrot.slane %v59_v7, 5  ;;  %v65_v26 = vrot.slane %v63_v9, 4  ;;  %v394_v27 = vrot.slane %v393_v12, 4  ;;  %v915_v9 = vld [vmem:[#allocation2 + $0x40] sm:$0xff]  }
  0x27   :  { %v399_v29 = vrot.slane %v1122_v0, 4  ;;  %v69_v31 = vshll.u32 %v1056_v21, 16  ;;  %v85_v7 = vrot.slane %v83_v16, 5  ;;  %v81_v33 = vrot.slane %v80_v14, 4 }
  0x28   :  { %853 = vmatmul.mubr.msk.bf16.vlgmr.msra.gmra.mrb[0].mxu0 %vm120_vm0, %v781_v11  ;;  %v66_v32 = vor.u32 %v65_v26, %v61_v25  ;;  %v89_v34 = vrot.slane %v87_v17, 4  ;;  %v407_v35 = vor.u32 %v406_v22, %v403_v13  ;;  %v93_v37 = vshll.u32 %v1073_v28, 16 }
  0x29   :  { %857 = vmatpush3.bf16.msra.mxu0 %v1088_v39  ;;  %860 = vmatprep.mubr.msk.bf16.mxu0 %vm120_vm0, %v786_v24  ;;  %v71_v36 = vrot.slane %v69_v31, 5  ;;  %v62_v16 = vsel %vm1142_vm11, %v57_v23, %v61_v25  ;;  %v792_v41 = vrot.slane %v491_v18, 10  ;;  %v502_v39 = vrot.slane %v1030_v3, 6  ;;  %v800_v23 = vld [vmem:[%s1242_s2] ss:$0 sm:$0xff] }
  0x2a   :  { %858 = vmatprep.subr.bf16.mxu0 %v914_v15  ;;  %v67_v21 = vrot.slane %v66_v32, 4  ;;  %v90_v38 = vor.u32 %v89_v34, %v85_v7  ;;  %v95_v42 = vrot.slane %v93_v37, 5  ;;  %v505_v43 = vrot.slane %v1093_v40, 6 }
  0x2b   :  { %v86_v44 = vsel %vm1142_vm11, %v81_v33, %v85_v7  ;;  %v398_v46 = vsel %vm1118_vm10, %v394_v27, %v1122_v0  ;;  %v408_v48 = vsel %vm1118_vm10, %v399_v29, %v407_v35  ;;  %v504_v50 = vrot.slane %v502_v39, 4 }
  0x2c   :  { %v72_v28 = vsel %vm1142_vm11, %v67_v21, %v71_v36  ;;  %v91_v45 = vrot.slane %v90_v38, 4  ;;  %v503_v40 = vsel %vm1159_vm12, %v792_v41, %v502_v39  ;;  %v787_v53 = vcombine.low %v398_v46, %v408_v48 }
  0x2d   :  { %859 = vmatpush3.bf16.msra.mxu0 %v914_v15  ;;  %v766_v49 = vcombine.low %v62_v16, %v72_v28  ;;  %v506_v52 = vsel %vm1159_vm12, %v504_v50, %v505_v43  ;;  %v509_v55 = vrot.slane %v1039_v8, 6  ;;  %v793_v58 = vrot.slane %v492_v57, 10  ;;  %v801_v57 = vld [vmem:[%s1244_s4] ss:$0 sm:$0xff]  ;;  %s981_s4 = smov [#allocation5]  }
  0x2e   :  { %864 = vmatprep.subr.bf16.mxu0 %v915_v9  ;;  %v96_v3 = vsel %vm1142_vm11, %v91_v45, %v95_v42  ;;  %v794_v54 = vcombine.low %v503_v40, %v506_v52  ;;  %v512_v60 = vrot.slane %v1104_v47, 6  ;;  %v978_v0 = vmov 0.0   ;;  %v920_v47 = vld [vmem:[%s1243_s3 + $0x8] sm:$0xff]   ;;  %s757_s13 = sshll.u32 %s981_s4, 4  ;;  %s758_s13 = int_to_ptr.vmem [resolvable:$true] %s757_s13 }
  0x2f   :  { %836 = vmatprep.mubr.msk.bf16.mxu1 %vm120_vm0, %v766_v49  ;;  %v767_v51 = vcombine.low %v86_v44, %v96_v3  ;;  %v511_v59 = vrot.slane %v509_v55, 4  ;;  %v510_v61 = vsel %vm1159_vm12, %v793_v58, %v509_v55  ;;  %872 = vmatprep.subr.bf16.mxu1 %v978_v0  ;;  %vm979_vm13 = vmmov 0   ;;  %s949_s14 = scalar_lea.vmem %s758_s13, 32  ;;  %p954_p9 = scmp.lt.s32.totalorder %s758_s13, %s758_s13 }
  0x30   :  { %v607_v10 = vlaneseq  ;;  %v980_v14 = vmov 14   ;;  %vm622_vm1 = vcmask 523264   ;;  %vm664_vm2 = vcmask 1041409   ;;  %p950_p8 = scmp.ne.s32.totalorder %s758_s13, %s949_s14  ;;  %p955_p10 = scmp.lt.s32.totalorder %s949_s14, %s949_s14 }
  0x31   :  { %837 = vmatmul.mubr.msk.bf16.vlgmr.msra.gmra.mrb[0].mxu1 %vm120_vm0, %v767_v51  ;;  %v513_v8 = vsel %vm1159_vm12, %v511_v59, %v512_v60 }
  0x32   :  { %v795_v62 = vcombine.low %v510_v61, %v513_v8  ;;  %873 = vmatpush3.bf16.msra.mxu1 %v919_v63  ;;  %880 = vmatprep.mubr.msk.bf16.mxu1 %vm979_vm13, %v978_v0  ;;  %v1206_v12 = vand.u32 127, %v607_v10  ;;  %v608_v13 = vshrl.u32 %v607_v10, 7  ;;  %p956_p11 = por %p955_p10, %p954_p9 }
  0x33   :  { %874 = vmatprep.subr.bf16.mxu1 %v978_v0 }
  0x34   :  { %861 = vmatmul.mubr.msk.bf16.vlgmr.msra.gmra.mrb[0].mxu0 %vm120_vm0, %v787_v53  ;;  %vm613_vm14 = vcmp.lt.s32.totalorder %v1206_v12, 40  ;;  %vm612_vm15 = vcmp.lt.s32.totalorder %v1206_v12, 20  ;;  %v609_v20 = vadd.s32 8, %v608_v13  ;;  %vm734_vm3 = vcmp.lt.s32.totalorder %v1206_v12, 8  ;;  %p957_p12 = pnand %p956_p11, %p950_p8 }
  0x35   :  { %865 = vmatpush3.bf16.msra.mxu0 %v915_v9  ;;  %868 = vmatprep.mubr.msk.bf16.mxu0 %vm120_vm0, %v794_v54  ;;  %v614_v15 = vsel %vm613_vm14, 13, %v980_v14 }
  0x36   :  { %866 = vmatprep.subr.bf16.mxu0 %v918_v56  ;;  %875 = vmatpush3.bf16.msra.mxu1 %v920_v47  ;;  %v615_v25 = vsel %vm612_vm15, 12, %v614_v15 }
  0x37   :  { %876 = vmatprep.subr.bf16.mxu1 %v978_v0 }
  0x39   :  { %867 = vmatpush3.bf16.msra.mxu0 %v918_v56 }
  0x3a   :  { %877 = vmatpush3.bf16.msra.mxu1 %v921_v1 }
  0x3b   :  { %878 = vmatprep.subr.bf16.mxu1 %v978_v0 }
  0x3e   :  { %879 = vmatpush3.bf16.msra.mxu1 %v922_v2 }
  0x40   :  { %869 = vmatmul.mubr.msk.bf16.vlgmr.msra.gmra.mrb[0].mxu0 %vm120_vm0, %v795_v62  ;;  %vm617_vm0 = vcmp.lt.s32.totalorder %v609_v20, %v615_v25 }
 0x104   :  { %v838_v4 = vpop.f32.mrb[0].mxu1 }
 0x105   :  { %v161_v5 = vpop.f32.mrb[1].mxu1 }
 0x106   :  { %v839_v6 = vpop.f32.mrb[2].mxu1 }
 0x107   :  { %v164_v11 = vpop.f32.mrb[3].mxu1 }
 0x113   :  { %v870_v19 = vpop.f32.mrb[0].mxu0 }
 0x114   :  { %v884_v22 = vadd.f32 %v870_v19, %v838_v4  ;;  %v577_v24 = vpop.f32.mrb[1].mxu0 }
 0x115   :  { %v885_v26 = vadd.f32 %v577_v24, %v161_v5  ;;  %v871_v18 = vpop.f32.mrb[2].mxu0 }
 0x116   :  { %v886_v27 = vadd.f32 %v871_v18, %v839_v6  ;;  %v580_v29 = vpop.f32.mrb[3].mxu0  ;;  %v605_v30 = vadd.f32 %v884_v22, %v800_v23 }
 0x117   :  { %v887_v31 = vadd.f32 %v580_v29, %v164_v11  ;;  %v603_v7 = vadd.f32 %v885_v26, %v800_v23 }
 0x118   :  { %v606_v9 = vadd.f32 %v886_v27, %v800_v23  ;;  %v632_v34 = vsel %vm622_vm1, %v605_v30, -inf }
 0x119   :  { %v604_v32 = vadd.f32 %v887_v31, %v800_v23  ;;  %v623_v37 = vsel %vm622_vm1, %v603_v7, -inf }
 0x11a   :  { %v621_v33 = vsel %vm617_vm0, %v606_v9, -inf }
 0x11b   :  { %v633_v35 = vsel %vm622_vm1, %v621_v33, -inf  ;;  %v619_v36 = vsel %vm617_vm0, %v604_v32, -inf }
 0x11c   :  { %v634_v16 = vmax.f32 %v632_v34, %v633_v35  ;;  %v624_v21 = vsel %vm622_vm1, %v619_v36, -inf }
 0x11d   :  { %v625_v38 = vmax.f32 %v623_v37, %v624_v21 }
 0x11e   :  { %v635_v41 = vrot.slane %v634_v16, 4 }
 0x11f   :  { %v626_v42 = vrot.slane %v625_v38, 4 }
 0x120   :  { %v636_v17 = vmax.f32 %v634_v16, %v635_v41 }
 0x121   :  { %v627_v39 = vmax.f32 %v625_v38, %v626_v42 }
 0x122   :  { %v637_v43 = vrot.slane %v636_v17, 2 }
 0x123   :  { %v628_v28 = vrot.slane %v627_v39, 2 }
 0x124   :  { %v638_v44 = vmax.f32 %v636_v17, %v637_v43 }
 0x125   :  { %v629_v45 = vmax.f32 %v627_v39, %v628_v28 }
 0x126   :  { %v639_v46 = vrot.slane %v638_v44, 1 }
 0x127   :  { %v630_v48 = vrot.slane %v629_v45, 1 }
 0x128   :  { %v640_v49 = vmax.f32 %v638_v44, %v639_v46 }
 0x129   :  { %v631_v50 = vmax.f32 %v629_v45, %v630_v48 }
 0x12a   :  { %v642_v3 = vmax.f32 %v640_v49, 0.0 }
 0x12b   :  { %v641_v40 = vmax.f32 %v631_v50, 0.0 }
 0x12c   :  { %v644_v51 = vpack.c.bf16 %v642_v3, %v642_v3 }
 0x12d   :  { %v643_v52 = vpack.c.bf16 %v641_v40, %v641_v40 }
 0x12e   :  { %v663_v53 = vunpack.c.l.b16 %v644_v51 }
 0x12f   :  { %v662_v54 = vunpack.c.l.b16 %v643_v52 }
 0x131   :  { %v665_v55 = vsel %vm664_vm2, %v663_v53, %v662_v54 }
 0x132   :  { %v666_v56 = vpack.c.b16 %v665_v55, %v665_v55 }
 0x134   :  { %881 = vmatmul.mubr.msk.bf16.vlgmr.msra.gmra.mrb[4].mxu1 %vm622_vm1, %v666_v56 }
 0x207   :  { %v728_v58 = vpop.f32.mrb[4].mxu1 }
 0x208   :  { %v729_v59 = vadd.f32 %v801_v57, %v728_v58  ;;  %v882_v60 = vpop.f32.mrb[5].mxu1 }
 0x209   :  { %v731_v61 = vpop.f32.mrb[6].mxu1 }
 0x20a   :  { %v883_v8 = vpop.f32.mrb[7].mxu1  ;;  %v735_v62 = vsel %vm734_vm3, %v729_v59, -inf }
 0x20b   :  { %v737_v63 = vsel %vm497_vm8, %v735_v62, -inf }
 0x20c   :  { %738 = vmax.xlane.f32.xlu0 %v737_v63 }
 0x299   :  { %v739_v0 = vpop.xlane.xlu0 %738 }
 0x29a   :  { %v740_v47 = vsub.f32 %v735_v62, %v739_v0 }
 0x29c   :  { %v741_v1 = vmul.f32 1.442695, %v740_v47 }
 0x29e   :  { %923 = vpow2.f32 %v741_v1 }
 0x2a8   :  { %v924_v2 = vpop.eup %923 }
 0x2a9   :  { %v743_v4 = vsel %vm497_vm8, %v924_v2, 0.0 }
 0x2aa   :  { %744 = vadd.xlane.f32.xlu0 %v743_v4 }
 0x337   :  { %v745_v5 = vpop.xlane.xlu0 %744 }
 0x338   :  { %925 = vlog2.f32 %v745_v5 }
 0x342   :  { %v926_v6 = vpop.eup %925 }
 0x343   :  { %v747_v10 = vmul.f32 0.6931472, %v926_v6 }
 0x345   :  { %v748_v11 = vsub.f32 %v740_v47, %v747_v10 }
 0x347   :  { %v749_v13 = vsel %vm734_vm3, %v748_v11, 0.0 }
 0x348   :  { %750 = vst [vmem:[#allocation5] sm:$0x3] %v749_v13 }
 0x349   :  { %960 = shalt.err (!%p957_p12)
}
 0x34a   :  { %s961_s17 = scalar_lea.hbm %s1245_s5, 32 }
 0x34b   :  { %p962_p13 = scmp.ne.s32.totalorder %s1245_s5, %s961_s17  ;;  %p965_p0 = scmp.lt.u32.totalorder %s961_s17, %s1245_s5 }
 0x34d   :  { %p967_p1 = pnand %p965_p0, %p962_p13 }
 0x34f   :  { %970 = shalt.err (!%p967_p1)
}
 0x350   :  { %760 = dma.vmem_to_hbm [thread:$0]  %s758_s13, 32, %s1245_s5, [#allocation4]  }
 0x351   :  { %973 = dma.done.wait [#allocation4], 32  }
 0x352   :  { %974 = vsyncadd [#allocation4], 4294967264 }
 0x353   :  { %764 = vsyncpa [#allocation3], 1 }
 0x354   :  { %765 = vsyncpa [#allocation4], 1 }

</bundles_post_ra>
